<compile_context>
chip_gen: v7x
topology: tpu7x:2x2x1
jax: 0.10.0
libtpu: 0.0.40
codegen_flags: <defaults>
</compile_context>

<pallas_src>
import functools
import math

import jax
import jax.numpy as jnp
from jax.experimental import pallas as pl
from jax.experimental.pallas import tpu as pltpu

# ----------------------------- configuration --------------------------------
BATCH = 2
SEQ_Q = 128          # query sequence length
SEQ_KV = 128         # key / value sequence length (softmax lane dim = 128)
INPUT_SHAPE = 64     # feature dim of inputs[0..2]
D_K = 64
D_V = 128            # lane-dense output (last dim = 128)


# ------------------------------- kernel --------------------------------------
def single_attention_kernel(xq_ref, xk_ref, xv_ref, w_ref, o_ref, *, d_k, d_v):
    # Block-squeezed refs (one batch element per grid step):
    #   xq_ref: (SEQ_Q, Din)   xk_ref/xv_ref: (SEQ_KV, Din)
    #   w_ref : (Din, 2*d_k + d_v)   o_ref: (SEQ_Q, d_v)
    # Static slices of the resident packed weight (1/sqrt(d_k) already folded
    # into the wq columns on the host).
    wq = w_ref[:, :d_k]
    wk = w_ref[:, d_k:2 * d_k]
    wv = w_ref[:, 2 * d_k:]

    # Q/K/V projections: plain 2-D MXU matmuls, f32 accumulation.
    q = jnp.dot(xq_ref[...], wq, preferred_element_type=jnp.float32)   # (SQ, d_k)
    k = jnp.dot(xk_ref[...], wk, preferred_element_type=jnp.float32)   # (SKV, d_k)
    v = jnp.dot(xv_ref[...], wv, preferred_element_type=jnp.float32)   # (SKV, d_v)

    # Scaled scores: K-transpose stays on the MXU operand path (no XLU vxpose).
    s = pl.dot(q, k, trans_b=True)                                     # (SQ, SKV)

    # Numerically stable softmax; denominator reciprocal on the EUP.
    s = s - jnp.max(s, axis=-1, keepdims=True)
    p = jnp.exp(s)
    p = p * pl.reciprocal(jnp.sum(p, axis=-1, keepdims=True), approx=True)

    # Attention output (lane-dense store: last dim = d_v = 128).
    o_ref[...] = jnp.dot(p, v, preferred_element_type=jnp.float32)


# ------------------------------- wrapper --------------------------------------
def pack_weights(wq, wk, wv, d_k):
    """Fold 1/sqrt(d_k) into wq and pack [wq|wk|wv] -> (Din, 2*d_k + d_v)."""
    return jnp.concatenate([wq * (1.0 / math.sqrt(d_k)), wk, wv], axis=1)


@functools.partial(jax.jit, static_argnames=("d_k", "d_v"))
def single_attention(xq, xk, xv, w_packed, *, d_k, d_v):
    b, sq, din = xq.shape
    skv = xk.shape[1]

    flops = 2 * (b * sq * din * d_k          # Q projection
                 + b * skv * din * d_k       # K projection
                 + b * skv * din * d_v       # V projection
                 + b * sq * skv * d_k        # scores
                 + b * sq * skv * d_v)       # attn @ V
    bytes_accessed = 4 * (xq.size + xk.size + xv.size + w_packed.size
                          + b * sq * d_v)

    kernel = functools.partial(single_attention_kernel, d_k=d_k, d_v=d_v)
    return pl.pallas_call(
        kernel,
        out_shape=jax.ShapeDtypeStruct((b, sq, d_v), jnp.float32),
        grid=(b,),   # batch-parallel: sharded across TensorCores on v7x
        in_specs=[
            pl.BlockSpec((None, sq, din), lambda i: (i, 0, 0)),
            pl.BlockSpec((None, skv, din), lambda i: (i, 0, 0)),
            pl.BlockSpec((None, skv, din), lambda i: (i, 0, 0)),
            # packed weights: constant index_map -> DMA'd once, VMEM-resident
            pl.BlockSpec((din, 2 * d_k + d_v), lambda i: (0, 0)),
        ],
        out_specs=pl.BlockSpec((None, sq, d_v), lambda i: (i, 0, 0)),
        compiler_params=pltpu.CompilerParams(
            dimension_semantics=("parallel",)),
        cost_estimate=pl.CostEstimate(
            flops=flops,
            transcendentals=b * sq * skv,
            bytes_accessed=bytes_accessed),
    )(xq, xk, xv, w_packed)


# ----------------------------- pure-JAX reference -----------------------------
def ref_single_attention(xq, xk, xv, wq, wk, wv, d_k):
    hi = jax.lax.Precision.HIGHEST
    q = jnp.einsum('bsi,ik->bsk', xq, wq, precision=hi)
    k = jnp.einsum('bsi,ik->bsk', xk, wk, precision=hi)
    v = jnp.einsum('bsi,iv->bsv', xv, wv, precision=hi)
    s = jnp.einsum('bqd,bkd->bqk', q, k, precision=hi) / math.sqrt(d_k)
    p = jax.nn.softmax(s, axis=-1)
    return jnp.einsum('bqk,bkv->bqv', p, v, precision=hi)


# --------------------------------- main ----------------------------------------
if __name__ == "__main__":
    key = jax.random.PRNGKey(0)
    kq, kk, kv_, kwq, kwk, kwv = jax.random.split(key, 6)

    # inputs[0], inputs[1], inputs[2] of the PyTorch forward
    xq = jax.random.normal(kq, (BATCH, SEQ_Q, INPUT_SHAPE), jnp.float32)
    xk = jax.random.normal(kk, (BATCH, SEQ_KV, INPUT_SHAPE), jnp.float32)
    xv = jax.random.normal(kv_, (BATCH, SEQ_KV, INPUT_SHAPE), jnp.float32)

    # xavier_uniform-style init; weights stored [in, out] (pre-transposed)
    def xavier(k, fan_in, fan_out):
        lim = math.sqrt(6.0 / (fan_in + fan_out))
        return jax.random.uniform(k, (fan_in, fan_out), jnp.float32, -lim, lim)

    wq = xavier(kwq, INPUT_SHAPE, D_K)
    wk = xavier(kwk, INPUT_SHAPE, D_K)
    wv = xavier(kwv, INPUT_SHAPE, D_V)

    # host-side packing (done once per parameter set, outside the hot path)
    w_packed = pack_weights(wq, wk, wv, D_K)

    out = single_attention(xq, xk, xv, w_packed, d_k=D_K, d_v=D_V)
    out = jax.block_until_ready(out)

    expected = ref_single_attention(xq, xk, xv, wq, wk, wv, D_K)
    assert out.shape == (BATCH, SEQ_Q, D_V)
    max_diff = float(jnp.max(jnp.abs(out - expected)))
    assert jnp.allclose(out, expected, atol=5e-3, rtol=5e-3), max_diff

    print("KERNEL_OK")
</pallas_src>

<mosaic_0001>
module attributes {stable_mosaic.version = 11 : i64} {
  func.func @single_attention_kernel(%arg0: i32, %arg1: memref<1x128x64xf32, #tpu.memory_space<vmem>>, %arg2: memref<1x128x64xf32, #tpu.memory_space<vmem>>, %arg3: memref<1x128x64xf32, #tpu.memory_space<vmem>>, %arg4: memref<64x256xf32, #tpu.memory_space<vmem>>, %arg5: memref<1x128x128xf32, #tpu.memory_space<vmem>>) attributes {dimension_semantics = [#tpu.dimension_semantics<parallel>], iteration_bounds = array<i64: 2>, scalar_prefetch = 0 : i64, scratch_operands = 0 : i64, tpu.core_type = #tpu.core_type<tc>, window_params = [{transform_indices = @transform_0, window_bounds = array<i64: 1, 128, 64>}, {transform_indices = @transform_1, window_bounds = array<i64: 1, 128, 64>}, {transform_indices = @transform_2, window_bounds = array<i64: 1, 128, 64>}, {pipeline_mode = #tpu.pipeline_mode<synchronous>, transform_indices = @transform_3, window_bounds = array<i64: 64, 256>}, {transform_indices = @transform_4, window_bounds = array<i64: 1, 128, 128>}]} {
    %c0 = arith.constant 0 : index
    %c0_0 = arith.constant 0 : index
    %0 = vector.load %arg4[%c0, %c0_0] : memref<64x256xf32, #tpu.memory_space<vmem>>, vector<64x64xf32>
    %c0_1 = arith.constant 0 : index
    %c64 = arith.constant 64 : index
    %1 = vector.load %arg4[%c0_1, %c64] : memref<64x256xf32, #tpu.memory_space<vmem>>, vector<64x64xf32>
    %c0_2 = arith.constant 0 : index
    %c128 = arith.constant 128 : index
    %2 = vector.load %arg4[%c0_2, %c128] : memref<64x256xf32, #tpu.memory_space<vmem>>, vector<64x128xf32>
    %c0_3 = arith.constant 0 : index
    %c0_4 = arith.constant 0 : index
    %c0_5 = arith.constant 0 : index
    %3 = vector.load %arg1[%c0_3, %c0_4, %c0_5] : memref<1x128x64xf32, #tpu.memory_space<vmem>>, vector<1x128x64xf32>
    %4 = vector.shape_cast %3 : vector<1x128x64xf32> to vector<128x64xf32>
    %cst = arith.constant dense<0.000000e+00> : vector<128x64xf32>
    %5 = tpu.matmul %4, %0, %cst {dimension_numbers = #tpu.dot_dimension_numbers<[1], [0], [0], [1], [0, 0, 1, 1], [], []>} : vector<128x64xf32>, vector<64x64xf32>, vector<128x64xf32> -> vector<128x64xf32>
    %c0_6 = arith.constant 0 : index
    %c0_7 = arith.constant 0 : index
    %c0_8 = arith.constant 0 : index
    %6 = vector.load %arg2[%c0_6, %c0_7, %c0_8] : memref<1x128x64xf32, #tpu.memory_space<vmem>>, vector<1x128x64xf32>
    %7 = vector.shape_cast %6 : vector<1x128x64xf32> to vector<128x64xf32>
    %cst_9 = arith.constant dense<0.000000e+00> : vector<128x64xf32>
    %8 = tpu.matmul %7, %1, %cst_9 {dimension_numbers = #tpu.dot_dimension_numbers<[1], [0], [0], [1], [0, 0, 1, 1], [], []>} : vector<128x64xf32>, vector<64x64xf32>, vector<128x64xf32> -> vector<128x64xf32>
    %c0_10 = arith.constant 0 : index
    %c0_11 = arith.constant 0 : index
    %c0_12 = arith.constant 0 : index
    %9 = vector.load %arg3[%c0_10, %c0_11, %c0_12] : memref<1x128x64xf32, #tpu.memory_space<vmem>>, vector<1x128x64xf32>
    %10 = vector.shape_cast %9 : vector<1x128x64xf32> to vector<128x64xf32>
    %cst_13 = arith.constant dense<0.000000e+00> : vector<128x128xf32>
    %11 = tpu.matmul %10, %2, %cst_13 {dimension_numbers = #tpu.dot_dimension_numbers<[1], [0], [0], [1], [0, 0, 1, 1], [], []>} : vector<128x64xf32>, vector<64x128xf32>, vector<128x128xf32> -> vector<128x128xf32>
    %cst_14 = arith.constant dense<0.000000e+00> : vector<128x128xf32>
    %12 = tpu.matmul %5, %8, %cst_14 {dimension_numbers = #tpu.dot_dimension_numbers<[1], [1], [0], [0], [0, 0, 1, 0], [], []>} : vector<128x64xf32>, vector<128x64xf32>, vector<128x128xf32> -> vector<128x128xf32>
    %cst_15 = arith.constant dense<0xFF800000> : vector<128xf32>
    %13 = vector.multi_reduction <maximumf>, %12, %cst_15 [1] : vector<128x128xf32> to vector<128xf32>
    %14 = vector.shape_cast %13 : vector<128xf32> to vector<128x1xf32>
    %15 = vector.broadcast %14 : vector<128x1xf32> to vector<128x128xf32>
    %16 = arith.subf %12, %15 : vector<128x128xf32>
    %17 = math.exp %16 : vector<128x128xf32>
    %cst_16 = arith.constant dense<0.000000e+00> : vector<128xf32>
    %18 = vector.multi_reduction <add>, %17, %cst_16 [1] : vector<128x128xf32> to vector<128xf32>
    %19 = vector.shape_cast %18 : vector<128xf32> to vector<128x1xf32>
    %20 = tpu.reciprocal %19 {approx = true} : vector<128x1xf32> -> vector<128x1xf32>
    %21 = vector.broadcast %20 : vector<128x1xf32> to vector<128x128xf32>
    %22 = arith.mulf %17, %21 : vector<128x128xf32>
    %cst_17 = arith.constant dense<0.000000e+00> : vector<128x128xf32>
    %23 = tpu.matmul %22, %11, %cst_17 {dimension_numbers = #tpu.dot_dimension_numbers<[1], [0], [0], [1], [0, 0, 1, 1], [], []>} : vector<128x128xf32>, vector<128x128xf32>, vector<128x128xf32> -> vector<128x128xf32>
    %c0_18 = arith.constant 0 : index
    %c0_19 = arith.constant 0 : index
    %c0_20 = arith.constant 0 : index
    %24 = vector.load %arg5[%c0_18, %c0_19, %c0_20] : memref<1x128x128xf32, #tpu.memory_space<vmem>>, vector<1x128x128xf32>
    %25 = vector.shape_cast %24 : vector<1x128x128xf32> to vector<128x128xf32>
    %26 = vector.shape_cast %23 : vector<128x128xf32> to vector<1x128x128xf32>
    tpu.vector_store %arg5[%c0_18, %c0_19, %c0_20], %26 {strides = array<i32>} : memref<1x128x128xf32, #tpu.memory_space<vmem>>, vector<1x128x128xf32>,
    return
  }
  func.func @transform_0(%arg0: i32) -> (i32, i32, i32) {
    %c0_i32 = arith.constant 0 : i32
    %c0_i32_0 = arith.constant 0 : i32
    %c0_i32_1 = arith.constant 0 : i32
    return %arg0, %c0_i32, %c0_i32_0 : i32, i32, i32
  }
  func.func @transform_1(%arg0: i32) -> (i32, i32, i32) {
    %c0_i32 = arith.constant 0 : i32
    %c0_i32_0 = arith.constant 0 : i32
    %c0_i32_1 = arith.constant 0 : i32
    return %arg0, %c0_i32, %c0_i32_0 : i32, i32, i32
  }
  func.func @transform_2(%arg0: i32) -> (i32, i32, i32) {
    %c0_i32 = arith.constant 0 : i32
    %c0_i32_0 = arith.constant 0 : i32
    %c0_i32_1 = arith.constant 0 : i32
    return %arg0, %c0_i32, %c0_i32_0 : i32, i32, i32
  }
  func.func @transform_3(%arg0: i32) -> (i32, i32) {
    %c0_i32 = arith.constant 0 : i32
    %c0_i32_0 = arith.constant 0 : i32
    %c0_i32_1 = arith.constant 0 : i32
    return %c0_i32, %c0_i32_0 : i32, i32
  }
  func.func @transform_4(%arg0: i32) -> (i32, i32, i32) {
    %c0_i32 = arith.constant 0 : i32
    %c0_i32_0 = arith.constant 0 : i32
    %c0_i32_1 = arith.constant 0 : i32
    return %arg0, %c0_i32, %c0_i32_0 : i32, i32, i32
  }
}

</mosaic_0001>

<bundles_post_ra>
// kernel: single_attention.1
= control target key start
LH: loop header
LB: loop body
LE: loop exit
PB: predicated region body
PF: predicated region fallthrough
CT: control target
= control target key end

     0   :  { %9 = vsyncpa [#allocation3], 0  ;;  %s2830_s0 = inlined_call_operand.vmem [shape: f32[2,128,64], index: 0, kind: input, shape index: {}]   ;;  %s2831_s1 = inlined_call_operand.vmem [shape: f32[2,128,64], index: 1, kind: input, shape index: {}]   ;;  %s2832_s2 = inlined_call_operand.vmem [shape: f32[2,128,64], index: 2, kind: input, shape index: {}]   ;;  %s2833_s3 = inlined_call_operand.vmem [shape: f32[64,256], index: 3, kind: input, shape index: {}]   ;;  %s2834_s4 = inlined_call_operand.hbm [shape: f32[2,128,128], index: 4, kind: output, shape index: {}]  }
   0x1   :  { %11 = vsyncpa [#allocation3 + $0x1], 0  ;;  %s2373_s15 = smov 0   ;;  %s2375_s16 = smov 0  }
   0x2   :  { %s2377_s17 = smov 0   ;;  %s2379_s18 = smov 0  }
   0x3 LB: > { %s2394_s19 = sadd.s32 4294967295, %s2342_s18   ;;  %s1558_s20 = sadd.s32 4294967294, %s2342_s18   ;;  %s2342_s18 = sphi %s2379_s18, %s2842_s18   ;;  %s2338_s17 = sphi %s2377_s17, %s2841_s17   ;;  %s2334_s16 = sphi %s2375_s16, %s2840_s16   ;;  %s2330_s15 = sphi %s2373_s15, %s2839_s15  }
   0x4   : > { %s2398_s21 = sadd.s32 1, %s2342_s18   ;;  %s123_s22 = sadd.s32 1, %s2338_s17 }
   0x5   : > { %s120_s23 = ssub.s32 %s2342_s18, %s2398_s21  ;;  %p133_p0 = scmp.ne.s32.totalorder %s2338_s17, %s2334_s16 }
   0x6   : > { %p121_p1 = scmp.eq.s32.totalorder %s120_s23, 0  ;;  %p134_p2 = scmp.eq.s32.totalorder %s2394_s19, 1 }
   0x7   : > { %p139_p3 = scmp.ne.s32.totalorder %s2334_s16, %s2330_s15  ;;  %p140_p4 = scmp.eq.s32.totalorder %s1558_s20, 1 }
   0x8   : > { %s2409_s24 = scalar_select %p121_p1, %s2338_s17, %s123_s22  }
   0x9   : > { %p2411_p5 = por %p134_p2, %p133_p0  ;;  %p2415_p6 = por %p140_p4, %p139_p3 }
   0xa   : > { %p1561_p7 = scmp.ge.s32.totalorder %s2342_s18, 1  ;;  %p185_p8 = scmp.lt.s32.totalorder %s2342_s18, 3 }
   0xc   : > { %p186_p9 = pnand %p1561_p7, %p185_p8 }
   0xd   : > { %v236_v0 = vld [vmem:[%s2833_s3] sm:$0xff] (!%p186_p9)  ;;  %v237_v1 = vld [vmem:[%s2833_s3 + $0x10] sm:$0xff] (!%p186_p9)  ;;  %p221_p10 = scmp.lt.s32.totalorder (!%p186_p9), %s2394_s19, 1  ;;  %s2344_s23 = smov (!%p186_p9), 64   ;;  %vm268_vm0 = vcmask (!%p186_p9), 523264  }
   0xe   : > { %189 = sbr.rel (%p186_p9) target bundleno = 1215 (0x4bf), region = 36  ;;  %v238_v2 = vld [vmem:[%s2833_s3 + $0x20] sm:$0xff] (!%p186_p9)  ;;  %v2196_v3 = vpack.i.bf16 (!%p186_p9), %v237_v1, %v236_v0  ;;  %v239_v4 = vld [vmem:[%s2833_s3 + $0x30] sm:$0xff] (!%p186_p9)  ;;  %v2026_v13 = vpack.c.bf16 (!%p186_p9), %v237_v1, %v236_v0  ;;  %vm2528_vm1 = vmpackc.low (!%p186_p9), %vm268_vm0, %vm268_vm0  ;;  %s218_s11 = sand.u32 (!%p186_p9), 1, %s2334_s16  }
   0xf   : > { %v240_v5 = vld [vmem:[%s2833_s3 + $0x40] sm:$0xff] (!%p186_p9)  ;;  %v241_v6 = vld [vmem:[%s2833_s3 + $0x50] sm:$0xff] (!%p186_p9)  ;;  %v2201_v10 = vpack.i.bf16 (!%p186_p9), %v239_v4, %v238_v2  ;;  %v2030_v14 = vpack.c.bf16 (!%p186_p9), %v239_v4, %v238_v2  ;;  %s1562_s12 = sshll.u32 (!%p186_p9), %s218_s11, 7  ;;  %s1657_s14 = sshll.u32 (!%p186_p9), %s2394_s19, 11 }
  0x10   : > { %v2206_v7 = vpack.i.bf16 (!%p186_p9), %v241_v6, %v240_v5  ;;  %v242_v8 = vld [vmem:[%s2833_s3 + $0x60] sm:$0xff] (!%p186_p9)  ;;  %v243_v9 = vld [vmem:[%s2833_s3 + $0x70] sm:$0xff] (!%p186_p9)  ;;  %2197 = vrot.lane.b32.xlu0 (!%p186_p9), %v2196_v3, %s2344_s23  ;;  %2027 = vmatprep.subr.bf16.mxu0 (!%p186_p9), %v2026_v13  ;;  %v2034_v15 = vpack.c.bf16 (!%p186_p9), %v241_v6, %v240_v5  ;;  %s2760_s13 = scalar_lea.vmem (!%p186_p9), [#allocation2], %s1562_s12  ;;  %s2345_s30 = smov (!%p186_p9), [#allocation2]  }
  0x11   : > { %v2211_v11 = vpack.i.bf16 (!%p186_p9), %v243_v9, %v242_v8  ;;  %2029 = vmatpush3.bf16.msra.mxu0 (!%p186_p9), %v2026_v13  ;;  %v2038_v17 = vpack.c.bf16 (!%p186_p9), %v243_v9, %v242_v8  ;;  %s1472_s20 = sshll.u32 (!%p186_p9), %s2760_s13, 4  ;;  %s2783_s20 = int_to_ptr.vmem [resolvable:$true] %s1472_s20 }
  0x12   : > { %2207 = vrot.lane.b32.xlu1 (!%p186_p9), %v2206_v7, %s2344_s23  ;;  %2031 = vmatprep.subr.bf16.mxu0 (!%p186_p9), %v2030_v14  ;;  %s2280_s29 = scalar_lea.vmem (!%p186_p9), %s2783_s20, 2048 }
  0x13   : > { %p2281_p11 = scmp.ne.s32.totalorder (!%p186_p9), %s2783_s20, %s2280_s29 }
  0x14   : > { %2202 = vrot.lane.b32.xlu0 (!%p186_p9), %v2201_v10, %s2344_s23 }
  0x15   : > { %s222_s27 = scalar_select %p221_p10, %s2394_s19, 1  ;;  %2033 = vmatpush3.bf16.msra.mxu0 %v2030_v14 }
  0x16   : > { %2212 = vrot.lane.b32.xlu1 %v2211_v11, %s2344_s23  ;;  %2035 = vmatprep.subr.bf16.mxu0 %v2034_v15  ;;  %s2789_s19 = scalar_lea.sflag [#allocation3], %s218_s11  ;;  %p2282_p12 = pnand %p2281_p11, %p2411_p5 }
  0x17   : > { %s2447_s28 = sshll.u32 %s222_s27, 7  ;;  %s2781_s27 = scalar_lea.hbm %s2834_s4, %s1657_s14 }
  0x18   : > { %s2453_s5 = scalar_lea.vmem %s2831_s1, %s2447_s28  ;;  %s2461_s8 = scalar_lea.vmem %s2830_s0, %s2447_s28 }
  0x19   : > { %v462_v12 = vld [vmem:[%s2453_s5] sm:$0xff]  ;;  %2037 = vmatpush3.bf16.msra.mxu0 %v2034_v15  ;;  %v253_v18 = vld [vmem:[%s2461_s8 + $0x8] sm:$0xff]  ;;  %v254_v19 = vld [vmem:[%s2461_s8 + $0x10] sm:$0xff]  ;;  %s2592_s23 = scalar_lea.vmem %s2832_s2, %s2447_s28  ;;  %p2283_p13 = pneg %p2282_p12 }
  0x1a   : > { %1850 = vmatprep.mubr.msk.f32.mxu1 %vm268_vm0, %v462_v12  ;;  %v252_v16 = vld [vmem:[%s2461_s8] sm:$0xff]  ;;  %2039 = vmatprep.subr.bf16.mxu0 %v2038_v17  ;;  %v255_v20 = vld [vmem:[%s2461_s8 + $0x18] sm:$0xff]  ;;  %v257_v22 = vld [vmem:[%s2461_s8 + $0x28] sm:$0xff] }
  0x1b   : > { %1810 = vmatprep.mubr.msk.f32.mxu0 %vm268_vm0, %v252_v16  ;;  %v256_v21 = vld [vmem:[%s2461_s8 + $0x20] sm:$0xff]  ;;  %v258_v23 = vld [vmem:[%s2461_s8 + $0x30] sm:$0xff]  ;;  %v259_v24 = vld [vmem:[%s2461_s8 + $0x38] sm:$0xff] }
  0x1c   : > { %v260_v25 = vld [vmem:[%s2461_s8 + $0x40] sm:$0xff]  ;;  %v261_v26 = vld [vmem:[%s2461_s8 + $0x48] sm:$0xff]  ;;  %v262_v27 = vld [vmem:[%s2461_s8 + $0x50] sm:$0xff] }
  0x1d   : > { %2041 = vmatpush3.bf16.msra.mxu0 %v2038_v17  ;;  %v263_v28 = vld [vmem:[%s2461_s8 + $0x58] sm:$0xff]  ;;  %v264_v29 = vld [vmem:[%s2461_s8 + $0x60] sm:$0xff]  ;;  %v265_v30 = vld [vmem:[%s2461_s8 + $0x68] sm:$0xff] }
  0x1e   : > { %v266_v31 = vld [vmem:[%s2461_s8 + $0x70] sm:$0xff]  ;;  %v267_v32 = vld [vmem:[%s2461_s8 + $0x78] sm:$0xff]  ;;  %v463_v49 = vld [vmem:[%s2453_s5 + $0x8] sm:$0xff] }
  0x1f   : > { %v464_v50 = vld [vmem:[%s2453_s5 + $0x10] sm:$0xff]  ;;  %v465_v51 = vld [vmem:[%s2453_s5 + $0x18] sm:$0xff]  ;;  %v466_v52 = vld [vmem:[%s2453_s5 + $0x20] sm:$0xff] }
  0x20   : > { %1811 = vmatmul.mubr.msk.f32.vlgmr.msra.gmra.mrb[0].mxu0 %vm268_vm0, %v253_v18  ;;  %v467_v53 = vld [vmem:[%s2453_s5 + $0x28] sm:$0xff]  ;;  %v468_v54 = vld [vmem:[%s2453_s5 + $0x30] sm:$0xff]  ;;  %v469_v55 = vld [vmem:[%s2453_s5 + $0x38] sm:$0xff] }
  0x21   : > { %1813 = vmatprep.mubr.msk.f32.mxu0 %vm268_vm0, %v254_v19  ;;  %v470_v56 = vld [vmem:[%s2453_s5 + $0x40] sm:$0xff]  ;;  %v471_v57 = vld [vmem:[%s2453_s5 + $0x48] sm:$0xff]  ;;  %v472_v58 = vld [vmem:[%s2453_s5 + $0x50] sm:$0xff] }
  0x22   : > { %v473_v59 = vld [vmem:[%s2453_s5 + $0x58] sm:$0xff]  ;;  %v474_v60 = vld [vmem:[%s2453_s5 + $0x60] sm:$0xff]  ;;  %v475_v61 = vld [vmem:[%s2453_s5 + $0x68] sm:$0xff] }
  0x23   : > { %v476_v62 = vld [vmem:[%s2453_s5 + $0x70] sm:$0xff]  ;;  %v477_v63 = vld [vmem:[%s2453_s5 + $0x78] sm:$0xff]  ;;  %s2284_s5 = sshll.u32 %s2345_s30, 4  ;;  %s2285_s5 = int_to_ptr.vmem [resolvable:$false] %s2284_s5 }
  0x24   : > { %1814 = vmatmul.mubr.msk.f32.gmra.mrb[2].mxu0 %vm268_vm0, %v255_v20  ;;  %s2286_s6 = scalar_lea.vmem %s2285_s5, 4096  ;;  %p2287_p0 = scmp.lt.s32.totalorder %s2783_s20, %s2285_s5 }
  0x25   : > { %1816 = vmatprep.mubr.msk.f32.mxu0 %vm268_vm0, %v256_v21  ;;  %p2288_p1 = scmp.lt.s32.totalorder %s2286_s6, %s2280_s29 }
  0x27   : > { %p2289_p2 = por %p2288_p1, %p2287_p0 }
  0x28   : > { %1817 = vmatmul.mubr.msk.f32.gmra.mrb[4].mxu0 %vm268_vm0, %v257_v22 }
  0x29   : > { %1819 = vmatprep.mubr.msk.f32.mxu0 %vm268_vm0, %v258_v23  ;;  %p2290_p3 = pnand %p2289_p2, %p2283_p13 }
  0x2c   : > { %1820 = vmatmul.mubr.msk.f32.gmra.mrb[6].mxu0 %vm268_vm0, %v259_v24 }
  0x2d   : > { %1822 = vmatprep.mubr.msk.f32.mxu0 %vm268_vm0, %v260_v25 }
  0x30   : > { %1823 = vmatmul.mubr.msk.f32.gmra.mrb[8].mxu0 %vm268_vm0, %v261_v26 }
  0x31   : > { %1825 = vmatprep.mubr.msk.f32.mxu0 %vm268_vm0, %v262_v27 }
  0x34   : > { %1826 = vmatmul.mubr.msk.f32.gmra.mrb[10].mxu0 %vm268_vm0, %v263_v28 }
  0x35   : > { %1828 = vmatprep.mubr.msk.f32.mxu0 %vm268_vm0, %v264_v29 }
  0x38   : > { %1829 = vmatmul.mubr.msk.f32.gmra.mrb[12].mxu0 %vm268_vm0, %v265_v30 }
  0x39   : > { %1831 = vmatprep.mubr.msk.f32.mxu0 %vm268_vm0, %v266_v31 }
  0x3c   : > { %1832 = vmatmul.mubr.msk.f32.gmra.mrb[14].mxu0 %vm268_vm0, %v267_v32 }
  0x82   : > { %v2198_v33 = vpop.permute.xlu0 %2197 }
  0x83   : > { %v2200_v34 = vunpack.i.h.bf16 %v2198_v33  ;;  %v2199_v35 = vunpack.i.l.bf16 %v2198_v33 }
  0x84   : > { %v2208_v36 = vpop.permute.xlu1 %2207 }
  0x85   : > { %v2042_v37 = vpack.c.bf16 %v2200_v34, %v2199_v35  ;;  %v2210_v38 = vunpack.i.h.bf16 %v2208_v36  ;;  %v2209_v39 = vunpack.i.l.bf16 %v2208_v36 }
  0x86   : > { %v2203_v40 = vpop.permute.xlu0 %2202 }
  0x87   : > { %v2205_v41 = vunpack.i.h.bf16 %v2203_v40  ;;  %v2204_v42 = vunpack.i.l.bf16 %v2203_v40  ;;  %2043 = vmatprep.subr.bf16.mxu1 %v2042_v37  ;;  %v2050_v45 = vpack.c.bf16 %v2210_v38, %v2209_v39 }
  0x88   : > { %v2213_v43 = vpop.permute.xlu1 %2212  ;;  %2045 = vmatpush3.bf16.msra.mxu1 %v2042_v37 }
  0x89   : > { %v2046_v44 = vpack.c.bf16 %v2205_v41, %v2204_v42  ;;  %v2215_v46 = vunpack.i.h.bf16 %v2213_v43  ;;  %v2214_v47 = vunpack.i.l.bf16 %v2213_v43  ;;  %v244_v41 = vld [vmem:[%s2833_s3 + $0x8] sm:$0xff]  ;;  %v245_v42 = vld [vmem:[%s2833_s3 + $0x18] sm:$0xff] }
  0x8a   : > { %v246_v43 = vld [vmem:[%s2833_s3 + $0x28] sm:$0xff] }
  0x8b   : > { %2047 = vmatprep.subr.bf16.mxu1 %v2046_v44  ;;  %v2054_v48 = vpack.c.bf16 %v2215_v46, %v2214_v47  ;;  %v248_v47 = vld [vmem:[%s2833_s3 + $0x48] sm:$0xff] }
  0x8c   : > { %2049 = vmatpush3.bf16.msra.mxu1 %v2046_v44  ;;  %v2058_v44 = vpack.c.bf16 %v245_v42, %v244_v41 }
  0x8d   : > { %2051 = vmatprep.subr.bf16.mxu1 %v2050_v45 }
  0x8e   : > { %2059 = vmatprep.subr.bf16.mxu0 %v2058_v44 }
  0x8f   : > { %2061 = vmatpush3.bf16.msra.mxu0 %v2058_v44 }
  0x90   : > { %2053 = vmatpush3.bf16.msra.mxu1 %v2050_v45  ;;  %v247_v45 = vld [vmem:[%s2833_s3 + $0x38] sm:$0xff] }
  0x91   : > { %2055 = vmatprep.subr.bf16.mxu1 %v2054_v48  ;;  %v2062_v46 = vpack.c.bf16 %v247_v45, %v246_v43 }
  0x93   : > { %2063 = vmatprep.subr.bf16.mxu0 %v2062_v46 }
  0x94   : > { %2057 = vmatpush3.bf16.msra.mxu1 %v2054_v48  ;;  %v249_v48 = vld [vmem:[%s2833_s3 + $0x58] sm:$0xff]  ;;  %2065 = vmatpush3.bf16.msra.mxu0 %v2062_v46 }
  0x97   : > { %1851 = vmatmul.mubr.msk.f32.vlgmr.msra.gmra.mrb[0].mxu1 %vm268_vm0, %v463_v49  ;;  %v703_v49 = vld [vmem:[%s2592_s23] sm:$0xff] }
  0x98   : > { %1853 = vmatprep.mubr.msk.f32.mxu1 %vm268_vm0, %v464_v50  ;;  %1890 = vmatprep.mubr.msk.f32.mxu0 %vm268_vm0, %v703_v49  ;;  %v2066_v50 = vpack.c.bf16 %v249_v48, %v248_v47 }
  0x9a   : > { %2067 = vmatprep.subr.bf16.mxu0 %v2066_v50 }
  0x9b   : > { %1854 = vmatmul.mubr.msk.f32.gmra.mrb[2].mxu1 %vm268_vm0, %v465_v51  ;;  %v250_v51 = vld [vmem:[%s2833_s3 + $0x68] sm:$0xff]  ;;  %2069 = vmatpush3.bf16.msra.mxu0 %v2066_v50 }
  0x9c   : > { %1856 = vmatprep.mubr.msk.f32.mxu1 %vm268_vm0, %v466_v52  ;;  %v251_v52 = vld [vmem:[%s2833_s3 + $0x78] sm:$0xff] }
  0x9f   : > { %1857 = vmatmul.mubr.msk.f32.gmra.mrb[4].mxu1 %vm268_vm0, %v467_v53  ;;  %v2070_v53 = vpack.c.bf16 %v251_v52, %v250_v51 }
  0xa0   : > { %1859 = vmatprep.mubr.msk.f32.mxu1 %vm268_vm0, %v468_v54  ;;  %v704_v54 = vld [vmem:[%s2592_s23 + $0x8] sm:$0xff] }
  0xa1   : > { %2071 = vmatprep.subr.bf16.mxu0 %v2070_v53 }
  0xa2   : > { %2073 = vmatpush3.bf16.msra.mxu0 %v2070_v53 }
  0xa3   : > { %1860 = vmatmul.mubr.msk.f32.gmra.mrb[6].mxu1 %vm268_vm0, %v469_v55  ;;  %v705_v55 = vld [vmem:[%s2592_s23 + $0x10] sm:$0xff] }
  0xa4   : > { %1862 = vmatprep.mubr.msk.f32.mxu1 %vm268_vm0, %v470_v56  ;;  %v706_v56 = vld [vmem:[%s2592_s23 + $0x18] sm:$0xff] }
  0xa5   : > { %1891 = vmatmul.mubr.msk.f32.vlgmr.msra.gmra.mrb[16].mxu0 %vm268_vm0, %v704_v54 }
  0xa6   : > { %1893 = vmatprep.mubr.msk.f32.mxu0 %vm268_vm0, %v705_v55 }
  0xa7   : > { %1863 = vmatmul.mubr.msk.f32.gmra.mrb[8].mxu1 %vm268_vm0, %v471_v57  ;;  %v707_v57 = vld [vmem:[%s2592_s23 + $0x20] sm:$0xff] }
  0xa8   : > { %1865 = vmatprep.mubr.msk.f32.mxu1 %vm268_vm0, %v472_v58  ;;  %v708_v58 = vld [vmem:[%s2592_s23 + $0x28] sm:$0xff] }
  0xa9   : > { %1894 = vmatmul.mubr.msk.f32.gmra.mrb[18].mxu0 %vm268_vm0, %v706_v56 }
  0xaa   : > { %1896 = vmatprep.mubr.msk.f32.mxu0 %vm268_vm0, %v707_v57 }
  0xab   : > { %1866 = vmatmul.mubr.msk.f32.gmra.mrb[10].mxu1 %vm268_vm0, %v473_v59  ;;  %v709_v59 = vld [vmem:[%s2592_s23 + $0x30] sm:$0xff] }
  0xac   : > { %1868 = vmatprep.mubr.msk.f32.mxu1 %vm268_vm0, %v474_v60  ;;  %v710_v60 = vld [vmem:[%s2592_s23 + $0x38] sm:$0xff] }
  0xad   : > { %1897 = vmatmul.mubr.msk.f32.gmra.mrb[20].mxu0 %vm268_vm0, %v708_v58 }
  0xae   : > { %1899 = vmatprep.mubr.msk.f32.mxu0 %vm268_vm0, %v709_v59 }
  0xaf   : > { %1869 = vmatmul.mubr.msk.f32.gmra.mrb[12].mxu1 %vm268_vm0, %v475_v61  ;;  %v711_v61 = vld [vmem:[%s2592_s23 + $0x40] sm:$0xff] }
  0xb0   : > { %1871 = vmatprep.mubr.msk.f32.mxu1 %vm268_vm0, %v476_v62  ;;  %v712_v62 = vld [vmem:[%s2592_s23 + $0x48] sm:$0xff] }
  0xb1   : > { %1900 = vmatmul.mubr.msk.f32.gmra.mrb[22].mxu0 %vm268_vm0, %v710_v60 }
  0xb2   : > { %1902 = vmatprep.mubr.msk.f32.mxu0 %vm268_vm0, %v711_v61 }
  0xb3   : > { %1872 = vmatmul.mubr.msk.f32.gmra.mrb[14].mxu1 %vm268_vm0, %v477_v63  ;;  %v713_v63 = vld [vmem:[%s2592_s23 + $0x50] sm:$0xff] }
  0xb5   : > { %1903 = vmatmul.mubr.msk.f32.gmra.mrb[24].mxu0 %vm268_vm0, %v712_v62 }
  0xb6   : > { %1905 = vmatprep.mubr.msk.f32.mxu0 %vm268_vm0, %v713_v63 }
  0xf3   : > { %v1812_v0 = vpop.f32.mrb[0].mxu0 }
  0xf4   : > { %v383_v1 = vpop.f32.mrb[1].mxu0 }
  0xf5   : > { %1946 = vmatprep.mubr.msk.f32.mxu1 %vm268_vm0, %v383_v1  ;;  %v715_v1 = vld [vmem:[%s2592_s23 + $0x60] sm:$0xff] }
  0xf7   : > { %v1815_v2 = vpop.f32.mrb[2].mxu0 }
  0xf8   : > { %v393_v3 = vpop.f32.mrb[3].mxu0 }
  0xfb   : > { %v1818_v4 = vpop.f32.mrb[4].mxu0 }
  0xfc   : > { %v403_v5 = vpop.f32.mrb[5].mxu0 }
  0xff   : > { %v1821_v6 = vpop.f32.mrb[6].mxu0 }
 0x100   : > { %v413_v7 = vpop.f32.mrb[7].mxu0 }
 0x103   : > { %v1824_v8 = vpop.f32.mrb[8].mxu0 }
 0x104   : > { %v423_v9 = vpop.f32.mrb[9].mxu0 }
 0x107   : > { %v1827_v10 = vpop.f32.mrb[10].mxu0 }
 0x108   : > { %v433_v11 = vpop.f32.mrb[11].mxu0 }
 0x10b   : > { %v1830_v12 = vpop.f32.mrb[12].mxu0 }
 0x10c   : > { %v443_v13 = vpop.f32.mrb[13].mxu0 }
 0x10f   : > { %v1833_v14 = vpop.f32.mrb[14].mxu0 }
 0x110   : > { %v453_v15 = vpop.f32.mrb[15].mxu0 }
 0x16a   : > { %v1852_v16 = vpop.f32.mrb[0].mxu1 }
 0x16b   : > { %v624_v17 = vpop.f32.mrb[1].mxu1 }
 0x16c   : > { %v2074_v19 = vpack.c.bf16 %v1852_v16, %v624_v17 }
 0x16e   : > { %2076 = vmatprep.subr.msk.bf16.mxu1 %vm2528_vm1, %v2074_v19  ;;  %v1855_v20 = vpop.f32.mrb[2].mxu1 }
 0x16f   : > { %2079 = vmatpush3.bf16.xpose.msk.msra.mxu1 %vm2528_vm1, %v2074_v19  ;;  %v634_v21 = vpop.f32.mrb[3].mxu1 }
 0x170   : > { %v2080_v22 = vpack.c.bf16 %v1855_v20, %v634_v21 }
 0x172   : > { %2082 = vmatprep.subr.msk.bf16.mxu1 %vm2528_vm1, %v2080_v22  ;;  %v1858_v23 = vpop.f32.mrb[4].mxu1 }
 0x173   : > { %v644_v24 = vpop.f32.mrb[5].mxu1 }
 0x174   : > { %v2086_v25 = vpack.c.bf16 %v1858_v23, %v644_v24 }
 0x176   : > { %v1861_v26 = vpop.f32.mrb[6].mxu1 }
 0x177   : > { %2085 = vmatpush3.bf16.xpose.msk.msra.mxu1 %vm2528_vm1, %v2080_v22  ;;  %v654_v27 = vpop.f32.mrb[7].mxu1 }
 0x178   : > { %2088 = vmatprep.subr.msk.bf16.mxu1 %vm2528_vm1, %v2086_v25  ;;  %v2092_v28 = vpack.c.bf16 %v1861_v26, %v654_v27  ;;  %v1892_v21 = vpop.f32.mrb[16].mxu0 }
 0x179   : > { %v833_v22 = vpop.f32.mrb[17].mxu0 }
 0x17a   : > { %v1864_v29 = vpop.f32.mrb[8].mxu1  ;;  %v2122_v23 = vpack.c.bf16 %v1892_v21, %v833_v22 }
 0x17b   : > { %v664_v30 = vpop.f32.mrb[9].mxu1 }
 0x17c   : > { %v2098_v31 = vpack.c.bf16 %v1864_v29, %v664_v30  ;;  %v1895_v24 = vpop.f32.mrb[18].mxu0  ;;  %2123 = vmatprep.subr.bf16.mxu0 %v2122_v23 }
 0x17d   : > { %2125 = vmatpush3.bf16.msra.mxu0 %v2122_v23 }
 0x17e   : > { %v1867_v32 = vpop.f32.mrb[10].mxu1 }
 0x17f   : > { %2091 = vmatpush3.bf16.xpose.msk.msra.mxu1 %vm2528_vm1, %v2086_v25  ;;  %v674_v33 = vpop.f32.mrb[11].mxu1  ;;  %v843_v25 = vpop.f32.mrb[19].mxu0 }
 0x180   : > { %2094 = vmatprep.subr.msk.bf16.mxu1 %vm2528_vm1, %v2092_v28  ;;  %v2104_v34 = vpack.c.bf16 %v1867_v32, %v674_v33  ;;  %v2126_v27 = vpack.c.bf16 %v1895_v24, %v843_v25 }
 0x182   : > { %v1870_v35 = vpop.f32.mrb[12].mxu1  ;;  %2127 = vmatprep.subr.bf16.mxu0 %v2126_v27 }
 0x183   : > { %v684_v36 = vpop.f32.mrb[13].mxu1  ;;  %2129 = vmatpush3.bf16.msra.mxu0 %v2126_v27 }
 0x184   : > { %v2110_v37 = vpack.c.bf16 %v1870_v35, %v684_v36 }
 0x186   : > { %v1873_v38 = vpop.f32.mrb[14].mxu1 }
 0x187   : > { %2097 = vmatpush3.bf16.xpose.msk.msra.mxu1 %vm2528_vm1, %v2092_v28  ;;  %v694_v39 = vpop.f32.mrb[15].mxu1 }
 0x188   : > { %2100 = vmatprep.subr.msk.bf16.mxu1 %vm2528_vm1, %v2098_v31  ;;  %v2116_v40 = vpack.c.bf16 %v1873_v38, %v694_v39 }
 0x18f   : > { %2103 = vmatpush3.bf16.xpose.msk.msra.mxu1 %vm2528_vm1, %v2098_v31  ;;  %v1898_v31 = vpop.f32.mrb[20].mxu0 }
 0x190   : > { %2106 = vmatprep.subr.msk.bf16.mxu1 %vm2528_vm1, %v2104_v34  ;;  %v853_v33 = vpop.f32.mrb[21].mxu0 }
 0x191   : > { %v2130_v35 = vpack.c.bf16 %v1898_v31, %v853_v33  ;;  %v1901_v38 = vpop.f32.mrb[22].mxu0 }
 0x192   : > { %v863_v39 = vpop.f32.mrb[23].mxu0 }
 0x193   : > { %2131 = vmatprep.subr.bf16.mxu0 %v2130_v35  ;;  %v2134_v41 = vpack.c.bf16 %v1901_v38, %v863_v39  ;;  %v1904_v46 = vpop.f32.mrb[24].mxu0 }
 0x194   : > { %2133 = vmatpush3.bf16.msra.mxu0 %v2130_v35  ;;  %v873_v47 = vpop.f32.mrb[25].mxu0 }
 0x195   : > { %2135 = vmatprep.subr.bf16.mxu0 %v2134_v41  ;;  %v2138_v50 = vpack.c.bf16 %v1904_v46, %v873_v47 }
 0x197   : > { %2109 = vmatpush3.bf16.xpose.msk.msra.mxu1 %vm2528_vm1, %v2104_v34 }
 0x198   : > { %2112 = vmatprep.subr.msk.bf16.mxu1 %vm2528_vm1, %v2110_v37  ;;  %2137 = vmatpush3.bf16.msra.mxu0 %v2134_v41 }
 0x199   : > { %2139 = vmatprep.subr.bf16.mxu0 %v2138_v50 }
 0x19c   : > { %2141 = vmatpush3.bf16.msra.mxu0 %v2138_v50 }
 0x19f   : > { %2115 = vmatpush3.bf16.xpose.msk.msra.mxu1 %vm2528_vm1, %v2110_v37 }
 0x1a0   : > { %2118 = vmatprep.subr.msk.bf16.mxu1 %vm2528_vm1, %v2116_v40 }
 0x1a7   : > { %2121 = vmatpush3.bf16.xpose.msk.msra.mxu1 %vm2528_vm1, %v2116_v40 }
 0x1ae   : > { %1947 = vmatmul.mubr.msk.f32.vlgmr.msra.gmra.mrb[16].mxu1 %vm268_vm0, %v1812_v0  ;;  %v714_v0 = vld [vmem:[%s2592_s23 + $0x58] sm:$0xff] }
 0x1af   : > { %1949 = vmatprep.mubr.msk.f32.mxu1 %vm268_vm0, %v393_v3  ;;  %1906 = vmatmul.mubr.msk.f32.gmra.mrb[26].mxu0 %vm268_vm0, %v714_v0  ;;  %v717_v3 = vld [vmem:[%s2592_s23 + $0x70] sm:$0xff] }
 0x1b0   : > { %1908 = vmatprep.mubr.msk.f32.mxu0 %vm268_vm0, %v715_v1 }
 0x1b2   : > { %1950 = vmatmul.mubr.msk.f32.gmra.mrb[18].mxu1 %vm268_vm0, %v1815_v2  ;;  %v716_v2 = vld [vmem:[%s2592_s23 + $0x68] sm:$0xff] }
 0x1b3   : > { %1952 = vmatprep.mubr.msk.f32.mxu1 %vm268_vm0, %v403_v5  ;;  %1909 = vmatmul.mubr.msk.f32.gmra.mrb[28].mxu0 %vm268_vm0, %v716_v2 }
 0x1b4   : > { %1911 = vmatprep.mubr.msk.f32.mxu0 %vm268_vm0, %v717_v3 }
 0x1b6   : > { %1953 = vmatmul.mubr.msk.f32.gmra.mrb[20].mxu1 %vm268_vm0, %v1818_v4  ;;  %v718_v4 = vld [vmem:[%s2592_s23 + $0x78] sm:$0xff] }
 0x1b7   : > { %1955 = vmatprep.mubr.msk.f32.mxu1 %vm268_vm0, %v413_v7  ;;  %1912 = vmatmul.mubr.msk.f32.gmra.mrb[30].mxu0 %vm268_vm0, %v718_v4 }
 0x1ba   : > { %1956 = vmatmul.mubr.msk.f32.gmra.mrb[22].mxu1 %vm268_vm0, %v1821_v6 }
 0x1bb   : > { %1958 = vmatprep.mubr.msk.f32.mxu1 %vm268_vm0, %v423_v9 }
 0x1be   : > { %1959 = vmatmul.mubr.msk.f32.gmra.mrb[24].mxu1 %vm268_vm0, %v1824_v8 }
 0x1bf   : > { %1961 = vmatprep.mubr.msk.f32.mxu1 %vm268_vm0, %v433_v11 }
 0x1c2   : > { %1962 = vmatmul.mubr.msk.f32.gmra.mrb[26].mxu1 %vm268_vm0, %v1827_v10 }
 0x1c3   : > { %1964 = vmatprep.mubr.msk.f32.mxu1 %vm268_vm0, %v443_v13 }
 0x1c6   : > { %1965 = vmatmul.mubr.msk.f32.gmra.mrb[28].mxu1 %vm268_vm0, %v1830_v12 }
 0x1c7   : > { %1967 = vmatprep.mubr.msk.f32.mxu1 %vm268_vm0, %v453_v15 }
 0x1ca   : > { %1968 = vmatmul.mubr.msk.f32.gmra.mrb[30].mxu1 %vm268_vm0, %v1833_v14 }
 0x281   : > { %v1948_v5 = vpop.f32.mrb[16].mxu1 }
 0x282   : > { %1155 = vmax.xlane.f32.xlu1 %v1948_v5  ;;  %v1074_v6 = vpop.f32.mrb[17].mxu1 }
 0x283   : > { %1153 = vmax.xlane.f32.xlu0 %v1074_v6 }
 0x285   : > { %v2641_v7 = vpop.f32.mrb[18].mxu1 }
 0x286   : > { %v1084_v8 = vpop.f32.mrb[19].mxu1 }
 0x287   : > { %1157 = vmax.xlane.f32.xlu0 %v1084_v8 }
 0x289   : > { %v2643_v9 = vpop.f32.mrb[20].mxu1 }
 0x28a   : > { %v2645_v10 = vpop.f32.mrb[21].mxu1 }
 0x28b   : > { %1159 = vmax.xlane.f32.xlu0 %v2641_v7  ;;  %1161 = vmax.xlane.f32.xlu1 %v2645_v10 }
 0x28d   : > { %v2649_v11 = vpop.f32.mrb[22].mxu1 }
 0x28e   : > { %v2651_v12 = vpop.f32.mrb[23].mxu1 }
 0x28f   : > { %1163 = vmax.xlane.f32.xlu0 %v2643_v9  ;;  %1165 = vmax.xlane.f32.xlu1 %v2651_v12 }
 0x291   : > { %v2655_v13 = vpop.f32.mrb[24].mxu1 }
 0x292   : > { %v2657_v14 = vpop.f32.mrb[25].mxu1 }
 0x293   : > { %1167 = vmax.xlane.f32.xlu0 %v2649_v11  ;;  %1169 = vmax.xlane.f32.xlu1 %v2657_v14 }
 0x295   : > { %v2661_v15 = vpop.f32.mrb[26].mxu1 }
 0x296   : > { %v2663_v16 = vpop.f32.mrb[27].mxu1 }
 0x297   : > { %1171 = vmax.xlane.f32.xlu0 %v2655_v13  ;;  %1173 = vmax.xlane.f32.xlu1 %v2663_v16 }
 0x299   : > { %v2667_v17 = vpop.f32.mrb[28].mxu1 }
 0x29a   : > { %v2669_v18 = vpop.f32.mrb[29].mxu1 }
 0x29b   : > { %1175 = vmax.xlane.f32.xlu0 %v2661_v15  ;;  %1177 = vmax.xlane.f32.xlu1 %v2669_v18 }
 0x29d   : > { %v2673_v19 = vpop.f32.mrb[30].mxu1 }
 0x29e   : > { %v2675_v20 = vpop.f32.mrb[31].mxu1 }
 0x29f   : > { %1179 = vmax.xlane.f32.xlu0 %v2667_v17  ;;  %1181 = vmax.xlane.f32.xlu1 %v2675_v20 }
 0x2a3   : > { %1183 = vmax.xlane.f32.xlu0 %v2673_v19 }
 0x30f   : > { %v1156_v26 = vpop.xlane.xlu1 %1155 }
 0x310   : > { %v1186_v28 = vsub.f32 %v1948_v5, %v1156_v26  ;;  %v1154_v29 = vpop.xlane.xlu0 %1153 }
 0x311   : > { %v1185_v30 = vsub.f32 %v1074_v6, %v1154_v29 }
 0x312   : > { %v1203_v32 = vmul.f32 1.442695, %v1186_v28 }
 0x313   : > { %v1201_v34 = vmul.f32 1.442695, %v1185_v30 }
 0x314   : > { %2216 = vpow2.f32 %v1203_v32  ;;  %v1158_v36 = vpop.xlane.xlu0 %1157 }
 0x315   : > { %2218 = vpow2.f32 %v1201_v34  ;;  %v1187_v37 = vsub.f32 %v1084_v8, %v1158_v36 }
 0x317   : > { %v1205_v40 = vmul.f32 1.442695, %v1187_v37 }
 0x318   : > { %v1160_v42 = vpop.xlane.xlu0 %1159  ;;  %v1162_v43 = vpop.xlane.xlu1 %1161 }
 0x319   : > { %2220 = vpow2.f32 %v1205_v40  ;;  %v1188_v44 = vsub.f32 %v2641_v7, %v1160_v42  ;;  %v1189_v45 = vsub.f32 %v2645_v10, %v1162_v43 }
 0x31b   : > { %v1207_v48 = vmul.f32 1.442695, %v1188_v44  ;;  %v1209_v49 = vmul.f32 1.442695, %v1189_v45 }
 0x31c   : > { %v1164_v51 = vpop.xlane.xlu0 %1163  ;;  %v1166_v52 = vpop.xlane.xlu1 %1165 }
 0x31d   : > { %2222 = vpow2.f32 %v1207_v48  ;;  %v1190_v53 = vsub.f32 %v2643_v9, %v1164_v51  ;;  %v1191_v54 = vsub.f32 %v2651_v12, %v1166_v52 }
 0x31e   : > { %v2684_v55 = vpop.eup %2216  ;;  %2224 = vpow2.f32 %v1209_v49 }
 0x31f   : > { %v2686_v56 = vpop.eup %2218  ;;  %v1211_v57 = vmul.f32 1.442695, %v1190_v53  ;;  %v1213_v58 = vmul.f32 1.442695, %v1191_v54  ;;  %1235 = vadd.xlane.f32.xlu0 %v2684_v55 }
 0x320   : > { %v1168_v59 = vpop.xlane.xlu0 %1167  ;;  %v1170_v60 = vpop.xlane.xlu1 %1169  ;;  %1233 = vadd.xlane.f32.xlu1 %v2686_v56 }
 0x321   : > { %2226 = vpow2.f32 %v1211_v57  ;;  %v1192_v61 = vsub.f32 %v2649_v11, %v1168_v59  ;;  %v1193_v62 = vsub.f32 %v2657_v14, %v1170_v60 }
 0x322   : > { %2228 = vpow2.f32 %v1213_v58 }
 0x323   : > { %v2692_v63 = vpop.eup %2220  ;;  %v1215_v0 = vmul.f32 1.442695, %v1192_v61  ;;  %v1217_v1 = vmul.f32 1.442695, %v1193_v62 }
 0x324   : > { %v1172_v2 = vpop.xlane.xlu0 %1171  ;;  %v1174_v3 = vpop.xlane.xlu1 %1173  ;;  %1237 = vadd.xlane.f32.xlu1 %v2692_v63 }
 0x325   : > { %2230 = vpow2.f32 %v1215_v0  ;;  %v1194_v4 = vsub.f32 %v2655_v13, %v1172_v2  ;;  %v1195_v5 = vsub.f32 %v2663_v16, %v1174_v3 }
 0x326   : > { %2232 = vpow2.f32 %v1217_v1 }
 0x327   : > { %v2697_v6 = vpop.eup %2222  ;;  %v1219_v7 = vmul.f32 1.442695, %v1194_v4  ;;  %v1221_v8 = vmul.f32 1.442695, %v1195_v5 }
 0x328   : > { %v2699_v9 = vpop.eup %2224  ;;  %v1176_v10 = vpop.xlane.xlu0 %1175  ;;  %1239 = vadd.xlane.f32.xlu0 %v2697_v6 }
 0x329   : > { %v1178_v11 = vpop.xlane.xlu1 %1177  ;;  %2234 = vpow2.f32 %v1219_v7  ;;  %v1196_v12 = vsub.f32 %v2661_v15, %v1176_v10  ;;  %1241 = vadd.xlane.f32.xlu1 %v2699_v9 }
 0x32a   : > { %v1197_v14 = vsub.f32 %v2669_v18, %v1178_v11  ;;  %2236 = vpow2.f32 %v1221_v8  ;;  %v1907_v18 = vpop.f32.mrb[26].mxu0 }
 0x32b   : > { %v2705_v13 = vpop.eup %2226  ;;  %v1223_v16 = vmul.f32 1.442695, %v1196_v12  ;;  %v883_v26 = vpop.f32.mrb[27].mxu0 }
 0x32c   : > { %v1225_v21 = vmul.f32 1.442695, %v1197_v14  ;;  %v2707_v22 = vpop.eup %2228  ;;  %v1180_v23 = vpop.xlane.xlu0 %1179  ;;  %1243 = vadd.xlane.f32.xlu0 %v2705_v13  ;;  %v2142_v30 = vpack.c.bf16 %v1907_v18, %v883_v26 }
 0x32d   : > { %v1182_v24 = vpop.xlane.xlu1 %1181  ;;  %2238 = vpow2.f32 %v1223_v16  ;;  %v1198_v25 = vsub.f32 %v2667_v17, %v1180_v23  ;;  %1245 = vadd.xlane.f32.xlu1 %v2707_v22  ;;  %v1910_v33 = vpop.f32.mrb[28].mxu0 }
 0x32e   : > { %v1199_v15 = vsub.f32 %v2675_v20, %v1182_v24  ;;  %2240 = vpow2.f32 %v1225_v21  ;;  %2143 = vmatprep.subr.bf16.mxu0 %v2142_v30  ;;  %v893_v20 = vpop.f32.mrb[29].mxu0 }
 0x32f   : > { %v2713_v27 = vpop.eup %2230  ;;  %v1227_v28 = vmul.f32 1.442695, %v1198_v25  ;;  %2145 = vmatpush3.bf16.msra.mxu0 %v2142_v30  ;;  %v2146_v36 = vpack.c.bf16 %v1910_v33, %v893_v20  ;;  %v1913_v38 = vpop.f32.mrb[30].mxu0 }
 0x330   : > { %v1229_v29 = vmul.f32 1.442695, %v1199_v15  ;;  %v2715_v31 = vpop.eup %2232  ;;  %1247 = vadd.xlane.f32.xlu0 %v2713_v27  ;;  %v1184_v32 = vpop.xlane.xlu0 %1183 }
 0x331   : > { %2242 = vpow2.f32 %v1227_v28  ;;  %v1200_v17 = vsub.f32 %v2673_v19, %v1184_v32  ;;  %1249 = vadd.xlane.f32.xlu1 %v2715_v31  ;;  %2147 = vmatprep.subr.bf16.mxu0 %v2146_v36  ;;  %v903_v19 = vpop.f32.mrb[31].mxu0 }
 0x332   : > { %2244 = vpow2.f32 %v1229_v29  ;;  %v2150_v40 = vpack.c.bf16 %v1913_v38, %v903_v19 }
 0x333   : > { %v2720_v34 = vpop.eup %2234  ;;  %v1231_v35 = vmul.f32 1.442695, %v1200_v17  ;;  %2149 = vmatpush3.bf16.msra.mxu0 %v2146_v36 }
 0x334   : > { %v2722_v37 = vpop.eup %2236  ;;  %1251 = vadd.xlane.f32.xlu0 %v2720_v34  ;;  %2151 = vmatprep.subr.bf16.mxu0 %v2150_v40 }
 0x335   : > { %2246 = vpow2.f32 %v1231_v35  ;;  %1253 = vadd.xlane.f32.xlu1 %v2722_v37 }
 0x337   : > { %v2726_v39 = vpop.eup %2238  ;;  %2153 = vmatpush3.bf16.msra.mxu0 %v2150_v40 }
 0x338   : > { %v2728_v41 = vpop.eup %2240  ;;  %1255 = vadd.xlane.f32.xlu0 %v2726_v39 }
 0x339   : > { %1257 = vadd.xlane.f32.xlu1 %v2728_v41 }
 0x33b   : > { %v2732_v42 = vpop.eup %2242 }
 0x33c   : > { %v2734_v43 = vpop.eup %2244  ;;  %1259 = vadd.xlane.f32.xlu0 %v2732_v42 }
 0x33d   : > { %1261 = vadd.xlane.f32.xlu1 %v2734_v43 }
 0x33f   : > { %v2738_v44 = vpop.eup %2246 }
 0x340   : > { %1263 = vadd.xlane.f32.xlu0 %v2738_v44 }
 0x3ac   : > { %v1236_v45 = vpop.xlane.xlu0 %1235 }
 0x3ad   : > { %2248 = vrcp.f32 %v1236_v45  ;;  %v1234_v46 = vpop.xlane.xlu1 %1233 }
 0x3ae   : > { %2250 = vrcp.f32 %v1234_v46 }
 0x3b1   : > { %v1238_v47 = vpop.xlane.xlu1 %1237 }
 0x3b2   : > { %2252 = vrcp.f32 %v1238_v47 }
 0x3b5   : > { %v1240_v48 = vpop.xlane.xlu0 %1239 }
 0x3b6   : > { %2254 = vrcp.f32 %v1240_v48  ;;  %v1242_v49 = vpop.xlane.xlu1 %1241 }
 0x3b7   : > { %v2249_v50 = vpop.eup %2248  ;;  %2256 = vrcp.f32 %v1242_v49 }
 0x3b8   : > { %v2251_v51 = vpop.eup %2250  ;;  %v1282_v54 = vmul.f32 %v2249_v50, %v2684_v55 }
 0x3b9   : > { %v1244_v52 = vpop.xlane.xlu0 %1243  ;;  %v1281_v53 = vmul.f32 %v2251_v51, %v2686_v56 }
 0x3ba   : > { %2258 = vrcp.f32 %v1244_v52  ;;  %v1246_v57 = vpop.xlane.xlu1 %1245 }
 0x3bb   : > { %2260 = vrcp.f32 %v1246_v57  ;;  %2002 = vmatprep.mubr.f32.mxu0 %v1281_v53 }
 0x3bc   : > { %v2253_v58 = vpop.eup %2252  ;;  %2003 = vmatmul.mubr.f32.vlgmr.msra.gmra.mrb[32].mxu0 %v1282_v54 }
 0x3bd   : > { %v1248_v59 = vpop.xlane.xlu0 %1247  ;;  %v1283_v60 = vmul.f32 %v2253_v58, %v2692_v63 }
 0x3be   : > { %2262 = vrcp.f32 %v1248_v59  ;;  %v1250_v61 = vpop.xlane.xlu1 %1249 }
 0x3bf   : > { %2264 = vrcp.f32 %v1250_v61  ;;  %2005 = vmatprep.mubr.f32.mxu0 %v1283_v60 }
 0x3c0   : > { %v2255_v62 = vpop.eup %2254 }
 0x3c1   : > { %v2257_v0 = vpop.eup %2256  ;;  %v1252_v1 = vpop.xlane.xlu0 %1251  ;;  %v1284_v56 = vmul.f32 %v2255_v62, %v2697_v6 }
 0x3c2   : > { %2266 = vrcp.f32 %v1252_v1  ;;  %v1254_v55 = vpop.xlane.xlu1 %1253  ;;  %v1285_v2 = vmul.f32 %v2257_v0, %v2699_v9 }
 0x3c3   : > { %2268 = vrcp.f32 %v1254_v55  ;;  %2006 = vmatmul.mubr.f32.gmra.mrb[34].mxu0 %v1284_v56 }
 0x3c4   : > { %v2259_v3 = vpop.eup %2258  ;;  %2008 = vmatprep.mubr.f32.mxu0 %v1285_v2 }
 0x3c5   : > { %v2261_v4 = vpop.eup %2260  ;;  %v1256_v5 = vpop.xlane.xlu0 %1255  ;;  %v1286_v63 = vmul.f32 %v2259_v3, %v2705_v13 }
 0x3c6   : > { %2270 = vrcp.f32 %v1256_v5  ;;  %v1258_v7 = vpop.xlane.xlu1 %1257  ;;  %v1287_v8 = vmul.f32 %v2261_v4, %v2707_v22 }
 0x3c7   : > { %2272 = vrcp.f32 %v1258_v7  ;;  %2009 = vmatmul.mubr.f32.gmra.mrb[36].mxu0 %v1286_v63 }
 0x3c8   : > { %v2263_v10 = vpop.eup %2262  ;;  %2011 = vmatprep.mubr.f32.mxu0 %v1287_v8 }
 0x3c9   : > { %v2265_v6 = vpop.eup %2264  ;;  %v1260_v11 = vpop.xlane.xlu0 %1259  ;;  %v1288_v9 = vmul.f32 %v2263_v10, %v2713_v27 }
 0x3ca   : > { %2274 = vrcp.f32 %v1260_v11  ;;  %v1262_v12 = vpop.xlane.xlu1 %1261  ;;  %v1289_v14 = vmul.f32 %v2265_v6, %v2715_v31 }
 0x3cb   : > { %2276 = vrcp.f32 %v1262_v12  ;;  %2012 = vmatmul.mubr.f32.gmra.mrb[38].mxu0 %v1288_v9 }
 0x3cc   : > { %v2267_v16 = vpop.eup %2266  ;;  %2014 = vmatprep.mubr.f32.mxu0 %v1289_v14 }
 0x3cd   : > { %v2269_v13 = vpop.eup %2268  ;;  %v1264_v21 = vpop.xlane.xlu0 %1263  ;;  %v1290_v22 = vmul.f32 %v2267_v16, %v2720_v34 }
 0x3ce   : > { %2278 = vrcp.f32 %v1264_v21  ;;  %v1291_v23 = vmul.f32 %v2269_v13, %v2722_v37 }
 0x3cf   : > { %2015 = vmatmul.mubr.f32.gmra.mrb[40].mxu0 %v1290_v22 }
 0x3d0   : > { %v2271_v24 = vpop.eup %2270  ;;  %2017 = vmatprep.mubr.f32.mxu0 %v1291_v23 }
 0x3d1   : > { %v2273_v25 = vpop.eup %2272  ;;  %v1292_v15 = vmul.f32 %v2271_v24, %v2726_v39 }
 0x3d2   : > { %v1293_v18 = vmul.f32 %v2273_v25, %v2728_v41 }
 0x3d3   : > { %2018 = vmatmul.mubr.f32.gmra.mrb[42].mxu0 %v1292_v15 }
 0x3d4   : > { %v2275_v26 = vpop.eup %2274  ;;  %2020 = vmatprep.mubr.f32.mxu0 %v1293_v18 }
 0x3d5   : > { %v2277_v27 = vpop.eup %2276  ;;  %v1294_v28 = vmul.f32 %v2275_v26, %v2732_v42 }
 0x3d6   : > { %v1295_v29 = vmul.f32 %v2277_v27, %v2734_v43 }
 0x3d7   : > { %2021 = vmatmul.mubr.f32.gmra.mrb[44].mxu0 %v1294_v28 }
 0x3d8   : > { %v2279_v30 = vpop.eup %2278  ;;  %2023 = vmatprep.mubr.f32.mxu0 %v1295_v29 }
 0x3d9   : > { %v1296_v31 = vmul.f32 %v2279_v30, %v2738_v44 }
 0x3db   : > { %2024 = vmatmul.mubr.f32.gmra.mrb[46].mxu0 %v1296_v31 }
 0x48f   : > { %v2004_v32 = vpop.f32.mrb[32].mxu0 }
 0x490   : > { %1443 = vst [vmem:[%s2760_s13 + $0x8] sm:$0xff] %v2004_v32  ;;  %v1363_v17 = vpop.f32.mrb[33].mxu0 }
 0x491   : > { %1442 = vst [vmem:[%s2760_s13] sm:$0xff] %v1363_v17 }
 0x496   : > { %v2007_v33 = vpop.f32.mrb[34].mxu0 }
 0x497   : > { %1445 = vst [vmem:[%s2760_s13 + $0x18] sm:$0xff] %v2007_v33  ;;  %v1373_v20 = vpop.f32.mrb[35].mxu0 }
 0x498   : > { %1444 = vst [vmem:[%s2760_s13 + $0x10] sm:$0xff] %v1373_v20 }
 0x49a   : > { %v2010_v34 = vpop.f32.mrb[36].mxu0 }
 0x49b   : > { %1447 = vst [vmem:[%s2760_s13 + $0x28] sm:$0xff] %v2010_v34  ;;  %v1383_v35 = vpop.f32.mrb[37].mxu0 }
 0x49c   : > { %1446 = vst [vmem:[%s2760_s13 + $0x20] sm:$0xff] %v1383_v35 }
 0x49e   : > { %v2013_v36 = vpop.f32.mrb[38].mxu0 }
 0x49f   : > { %1449 = vst [vmem:[%s2760_s13 + $0x38] sm:$0xff] %v2013_v36  ;;  %v1393_v37 = vpop.f32.mrb[39].mxu0 }
 0x4a0   : > { %1448 = vst [vmem:[%s2760_s13 + $0x30] sm:$0xff] %v1393_v37 }
 0x4a2   : > { %v2016_v38 = vpop.f32.mrb[40].mxu0 }
 0x4a3   : > { %1451 = vst [vmem:[%s2760_s13 + $0x48] sm:$0xff] %v2016_v38  ;;  %v1403_v19 = vpop.f32.mrb[41].mxu0 }
 0x4a4   : > { %1450 = vst [vmem:[%s2760_s13 + $0x40] sm:$0xff] %v1403_v19 }
 0x4a6   : > { %v2019_v39 = vpop.f32.mrb[42].mxu0 }
 0x4a7   : > { %1453 = vst [vmem:[%s2760_s13 + $0x58] sm:$0xff] %v2019_v39  ;;  %v1413_v40 = vpop.f32.mrb[43].mxu0 }
 0x4a8   : > { %1452 = vst [vmem:[%s2760_s13 + $0x50] sm:$0xff] %v1413_v40 }
 0x4aa   : > { %v2022_v41 = vpop.f32.mrb[44].mxu0 }
 0x4ab   : > { %1455 = vst [vmem:[%s2760_s13 + $0x68] sm:$0xff] %v2022_v41  ;;  %v1423_v42 = vpop.f32.mrb[45].mxu0 }
 0x4ac   : > { %1454 = vst [vmem:[%s2760_s13 + $0x60] sm:$0xff] %v1423_v42 }
 0x4ae   : > { %v2025_v43 = vpop.f32.mrb[46].mxu0 }
 0x4af   : > { %1457 = vst [vmem:[%s2760_s13 + $0x78] sm:$0xff] %v2025_v43  ;;  %v1433_v44 = vpop.f32.mrb[47].mxu0 }
 0x4b0   : > { %1456 = vst [vmem:[%s2760_s13 + $0x70] sm:$0xff] %v1433_v44 }
 0x4b1   : > { %2293 = shalt.err (!%p2290_p3)
}
 0x4b2   : > { %s2294_s7 = scalar_lea.hbm %s2781_s27, 2048  ;;  %s2298_s9 = scalar_lea.hbm %s2834_s4, 4096 }
 0x4b3   : > { %p2295_p4 = scmp.ne.s32.totalorder %s2781_s27, %s2294_s7  ;;  %p2299_p9 = scmp.lt.u32.totalorder %s2781_s27, %s2834_s4 }
 0x4b4   : > { %p2300_p10 = scmp.lt.u32.totalorder %s2298_s9, %s2294_s7  ;;  %p2302_p12 = scmp.lt.u32.totalorder %s2294_s7, %s2781_s27 }
 0x4b5   : > { %p2296_p7 = pnand %p2295_p4, %p2411_p5 }
 0x4b6   : > { %p2301_p11 = por %p2300_p10, %p2299_p9 }
 0x4b7   : > { %p2297_p8 = pneg %p2296_p7 }
 0x4b8   : > { %p2303_p13 = por %p2302_p12, %p2301_p11 }
 0x4ba   : > { %p2304_p0 = pnand %p2303_p13, %p2297_p8 }
 0x4bc   : > { %2307 = shalt.err (!%p2304_p0)
}
 0x4bd   : > { %s2346_s12 = smov 128   ;;  %s2347_s13 = smov 8  }
 0x4be   : > { %2154 = dma.vmem_to_hbm [thread:$0]  (%p2411_p5), %s2783_s20, 2048, %s2781_s27, %s2789_s19, %s2346_s12, %s2346_s12, %s2347_s13  }
 0x4bf PF: > { %p2160_p1 = scmp.ge.s32.totalorder %s2342_s18, 2  ;;  %s1487_s14 = sand.u32 1, %s2330_s15  }
 0x4c0   : > { %s1488_s22 = scalar_lea.sflag [#allocation3], %s1487_s14 }
 0x4c1   : > { %p2157_p2 = pnand %p2160_p1, %p2415_p6 }
 0x4c3   : > { %2325 = dma.done.wait (!%p2157_p2), %s1488_s22, 2048  }
 0x4c4   : > { %2327 = vsyncadd (!%p2157_p2), %s1488_s22, 4294965248  ;;  %p14_p3 = scmp.ge.s32.totalorder %s2398_s21, 4   ;;  %s2839_s15 = smov %s2334_s16 }
 0x4c5   : > { %s2840_s16 = smov %s2338_s17  ;;  %s2841_s17 = smov %s2409_s24 }
 0x4c6   : > { %s2842_s18 = smov %s2398_s21  ;;  %16 = sbr.rel (!%p14_p3) target bundleno = 3 (0x3), region = 77 }
 0x4cd   :  { %1493 = vsyncpa [#allocation3], 1 }
 0x4ce   :  { %1495 = vsyncpa [#allocation3 + $0x1], 1 }

</bundles_post_ra>
